<compile_context>
chip_gen: v7x
topology: tpu7x:2x2x1
jax: 0.10.0
libtpu: 0.0.40
codegen_flags: <defaults>
</compile_context>

<pallas_src>
import functools

import numpy as np
import jax
import jax.numpy as jnp
from jax.experimental import pallas as pl
from jax.experimental.pallas import tpu as pltpu

BN_EPS = 1e-5


def _default_vmem_limit_bytes():
    """Generation-aware scoped-VMEM limit: ~75% of physical, capped at 100 MiB."""
    try:
        cap = int(pltpu.get_tpu_info().vmem_capacity_bytes)
    except Exception:
        cap = 128 << 20  # v5e/v6e physical; safe fallback
    return min((cap * 3) // 4, 100 << 20)


# --------------------------------------------------------------------------
# Fused single-block kernel (problem small enough to sit in VMEM at once).
# --------------------------------------------------------------------------
def _fused_kernel(x_ref, w_ref, gamma_ref, beta_ref, o_ref):
    # Linear (bias omitted: it cancels in training-mode BN centering).
    z = jnp.dot(x_ref[...], w_ref[...], preferred_element_type=jnp.float32)
    # BatchNorm1d (training mode): batch mean / biased variance.
    mean = jnp.mean(z, axis=0, keepdims=True)
    centered = z - mean
    var = jnp.mean(centered * centered, axis=0, keepdims=True)
    scale = gamma_ref[...] * jax.lax.rsqrt(var + BN_EPS)
    # ReLU
    o_ref[...] = jnp.maximum(centered * scale + beta_ref[...], 0.0).astype(o_ref.dtype)


# --------------------------------------------------------------------------
# Tiled two-phase path.
# Phase 1: z = x @ W per (cout, batch) tile; per-channel sum / sumsq are
#          accumulated across the batch grid axis (reduction axis last).
#          z is stored narrow (compute_dtype); stats use the f32 dot result.
# --------------------------------------------------------------------------
def _matmul_stats_kernel(x_ref, w_ref, z_ref, s_ref, ss_ref):
    @pl.when(pl.program_id(1) == 0)
    def _():
        s_ref[...] = jnp.zeros_like(s_ref)
        ss_ref[...] = jnp.zeros_like(ss_ref)

    z = jnp.dot(x_ref[...], w_ref[...], preferred_element_type=jnp.float32)
    z_ref[...] = z.astype(z_ref.dtype)          # bf16 store by default
    s_ref[...] += jnp.sum(z, axis=0, keepdims=True)
    ss_ref[...] += jnp.sum(z * z, axis=0, keepdims=True)


# Phase 2: normalize with full-batch stats, affine, ReLU.
def _bn_relu_kernel(z_ref, s_ref, ss_ref, gamma_ref, beta_ref, o_ref, *, inv_b):
    mean = s_ref[...] * inv_b
    var = jnp.maximum(ss_ref[...] * inv_b - mean * mean, 0.0)   # clamp cancellation
    scale = gamma_ref[...] * jax.lax.rsqrt(var + BN_EPS)
    shift = beta_ref[...] - mean * scale
    z = z_ref[...].astype(jnp.float32)
    o_ref[...] = jnp.maximum(z * scale + shift, 0.0).astype(o_ref.dtype)


# --------------------------------------------------------------------------
# Wrapper
# --------------------------------------------------------------------------
def fcl_forward(x, w, gamma, beta, *, block_b=512, block_cout=256,
                compute_dtype=jnp.bfloat16, w_resident_bytes=4 << 20,
                vmem_limit_bytes=None):
    """x: (B, Cin) f32; w: (Cin, Cout); gamma/beta: (1, Cout). Returns (B, Cout) f32.

    compute_dtype: dtype of the matmul operands and of the materialized z
    (bf16 default for MXU throughput + halved HBM traffic; f32 for exactness).
    """
    B, Cin = x.shape
    Cout = w.shape[1]
    if vmem_limit_bytes is None:
        vmem_limit_bytes = _default_vmem_limit_bytes()

    itemsize = np.dtype(compute_dtype).itemsize
    x_c = x.astype(compute_dtype)
    w_c = w.astype(compute_dtype)
    gamma = gamma.astype(jnp.float32)
    beta = beta.astype(jnp.float32)

    # ---- small fused path, gated on a VMEM-bytes estimate (not just B) ----
    fused_bytes = ((B * Cin + Cin * Cout) * itemsize       # operands
                   + 2 * B * Cout * 4                      # f32 z + output
                   + 2 * Cout * 4)                         # gamma/beta
    if B <= block_b and fused_bytes <= min(vmem_limit_bytes // 3, 12 << 20):
        full = lambda shape: pl.BlockSpec(shape, lambda: tuple(0 for _ in shape))
        return pl.pallas_call(
            _fused_kernel,
            out_shape=jax.ShapeDtypeStruct((B, Cout), jnp.float32),
            grid=(),
            in_specs=[full((B, Cin)), full((Cin, Cout)),
                      full((1, Cout)), full((1, Cout))],
            out_specs=full((B, Cout)),
            compiler_params=pltpu.CompilerParams(vmem_limit_bytes=vmem_limit_bytes),
        )(x_c, w_c, gamma, beta)

    # ---- tiled two-phase path ----
    block_b = max(8, min(block_b, ((B + 7) // 8) * 8))
    B_pad = ((B + block_b - 1) // block_b) * block_b
    if B_pad != B:
        # Zero rows contribute exactly 0 to sum and sumsq (no bias inside the
        # matmul), so the statistics stay exact with inv_b = 1/B below.
        x_c = jnp.pad(x_c, ((0, B_pad - B), (0, 0)))
    n_i = B_pad // block_b

    # Resident weight (no channel grid axis) when the weight tile is small:
    # x is then streamed from HBM exactly once.
    if Cin * Cout * itemsize <= w_resident_bytes or Cout % block_cout != 0:
        block_cout = Cout
    n_j = Cout // block_cout
    # TODO(synk): on v7x a degenerate n_j == 1 leaves one TensorCore idle; a
    # batch split with a small cross-core stats combine would use both TCs.
    # TODO(synk): for very small Cin it can be cheaper to skip materializing z
    # entirely and recompute x @ W in phase 2 (trade flops for HBM traffic).

    z, s, ss = pl.pallas_call(
        _matmul_stats_kernel,
        out_shape=(
            jax.ShapeDtypeStruct((B_pad, Cout), compute_dtype),  # pre-BN activations
            jax.ShapeDtypeStruct((1, Cout), jnp.float32),        # per-channel sum
            jax.ShapeDtypeStruct((1, Cout), jnp.float32),        # per-channel sumsq
        ),
        grid=(n_j, n_i),
        in_specs=[
            pl.BlockSpec((block_b, Cin), lambda j, i: (i, 0)),
            pl.BlockSpec((Cin, block_cout), lambda j, i: (0, j)),
        ],
        out_specs=(
            pl.BlockSpec((block_b, block_cout), lambda j, i: (i, j)),
            pl.BlockSpec((1, block_cout), lambda j, i: (0, j)),
            pl.BlockSpec((1, block_cout), lambda j, i: (0, j)),
        ),
        compiler_params=pltpu.CompilerParams(
            dimension_semantics=("parallel", "arbitrary"),
            vmem_limit_bytes=vmem_limit_bytes,
        ),
    )(x_c, w_c)

    out = pl.pallas_call(
        functools.partial(_bn_relu_kernel, inv_b=1.0 / B),
        out_shape=jax.ShapeDtypeStruct((B_pad, Cout), jnp.float32),
        grid=(n_j, n_i),
        in_specs=[
            pl.BlockSpec((block_b, block_cout), lambda j, i: (i, j)),
            pl.BlockSpec((1, block_cout), lambda j, i: (0, j)),
            pl.BlockSpec((1, block_cout), lambda j, i: (0, j)),
            pl.BlockSpec((1, block_cout), lambda j, i: (0, j)),
            pl.BlockSpec((1, block_cout), lambda j, i: (0, j)),
        ],
        out_specs=pl.BlockSpec((block_b, block_cout), lambda j, i: (i, j)),
        compiler_params=pltpu.CompilerParams(
            dimension_semantics=("parallel", "parallel"),
            vmem_limit_bytes=vmem_limit_bytes,
        ),
    )(z, s, ss, gamma, beta)

    return out[:B] if B_pad != B else out


# --------------------------------------------------------------------------
# Parameter init matching the PyTorch module's __init__.
# --------------------------------------------------------------------------
def init_fcl_params(key, in_channels, out_channels):
    k_w, k_b = jax.random.split(key)
    # nn.init.xavier_uniform_ on weight (Cout, Cin): bound = sqrt(6/(fan_in+fan_out))
    bound_w = (6.0 / (in_channels + out_channels)) ** 0.5
    w_t = jax.random.uniform(
        k_w, (out_channels, in_channels), jnp.float32, -bound_w, bound_w
    )
    w = w_t.T  # stored as (Cin, Cout) for x @ W
    # nn.Linear default bias init: U(-1/sqrt(fan_in), 1/sqrt(fan_in)).
    # NOTE: the forward does not use b (it cancels under training-mode BN);
    # kept only so the reference check can prove the cancellation.
    bound_b = 1.0 / (in_channels ** 0.5)
    b = jax.random.uniform(k_b, (1, out_channels), jnp.float32, -bound_b, bound_b)
    # BatchNorm1d affine params: gamma=1, beta=0
    gamma = jnp.ones((1, out_channels), jnp.float32)
    beta = jnp.zeros((1, out_channels), jnp.float32)
    return w, b, gamma, beta


def fcl_reference(x, w, b, gamma, beta):
    """Pure-JAX reference of Linear(+bias) -> BatchNorm1d(train) -> ReLU (f32)."""
    z = x @ w + b
    mu = z.mean(axis=0, keepdims=True)
    var = ((z - mu) ** 2).mean(axis=0, keepdims=True)
    return jnp.maximum((z - mu) * jax.lax.rsqrt(var + BN_EPS) * gamma + beta, 0.0)


# TODO(synk): BatchNorm1d running_mean/running_var buffer updates (momentum
# state) are not emitted; only the training-mode forward normalization is done.

if __name__ == "__main__":
    key = jax.random.PRNGKey(0)
    k1, k2, k3, k4 = jax.random.split(key, 4)

    # ---- fused single-block path ----
    B, C_IN, C_OUT = 8, 32, 128
    x = jax.random.normal(k1, (B, C_IN), jnp.float32)
    w, b, gamma, beta = init_fcl_params(k2, C_IN, C_OUT)
    ref = fcl_reference(x, w, b, gamma, beta)

    # exact f32 compute path: tight tolerance vs the f32 reference
    out_f32 = fcl_forward(x, w, gamma, beta, compute_dtype=jnp.float32)
    jax.block_until_ready(out_f32)
    assert jnp.allclose(out_f32, ref, atol=1e-4, rtol=1e-4), "fused f32 mismatch"

    # default bf16 operands: loosened tolerance (documented bf16 rounding)
    out_bf16 = fcl_forward(x, w, gamma, beta)
    jax.block_until_ready(out_bf16)
    assert jnp.allclose(out_bf16, ref, atol=5e-2, rtol=5e-2), "fused bf16 mismatch"

    # ---- tiled two-phase path (small tiles; B not divisible -> padding) ----
    B2, C_IN2, C_OUT2 = 72, 32, 256
    x2 = jax.random.normal(k3, (B2, C_IN2), jnp.float32)
    w2, b2, gamma2, beta2 = init_fcl_params(k4, C_IN2, C_OUT2)
    ref2 = fcl_reference(x2, w2, b2, gamma2, beta2)

    # bf16 default, force channel tiling (n_j=2) to exercise the 2-D grid
    out2 = fcl_forward(x2, w2, gamma2, beta2, block_b=16, block_cout=128,
                       w_resident_bytes=0)
    jax.block_until_ready(out2)
    assert out2.shape == (B2, C_OUT2)
    assert jnp.allclose(out2, ref2, atol=5e-2, rtol=5e-2), "tiled bf16 mismatch"

    # f32 compute, resident-weight path (n_j=1): exact check of padding + stats
    out3 = fcl_forward(x2, w2, gamma2, beta2, block_b=16,
                       compute_dtype=jnp.float32)
    jax.block_until_ready(out3)
    assert jnp.allclose(out3, ref2, atol=1e-4, rtol=1e-4), "tiled f32 mismatch"

    print("KERNEL_OK")
</pallas_src>

<mosaic_0001>
module attributes {stable_mosaic.version = 11 : i64} {
  func.func @_fused_kernel(%arg0: memref<8x32xf32, #tpu.memory_space<vmem>>, %arg1: memref<32x128xf32, #tpu.memory_space<vmem>>, %arg2: memref<1x128xf32, #tpu.memory_space<vmem>>, %arg3: memref<1x128xf32, #tpu.memory_space<vmem>>, %arg4: memref<8x128xf32, #tpu.memory_space<vmem>>) attributes {dimension_semantics = [], scalar_prefetch = 0 : i64, scratch_operands = 0 : i64, tpu.core_type = #tpu.core_type<tc>} {
    %c0 = arith.constant 0 : index
    %c0_0 = arith.constant 0 : index
    %0 = vector.load %arg0[%c0, %c0_0] : memref<8x32xf32, #tpu.memory_space<vmem>>, vector<8x32xf32>
    %c0_1 = arith.constant 0 : index
    %c0_2 = arith.constant 0 : index
    %1 = vector.load %arg1[%c0_1, %c0_2] : memref<32x128xf32, #tpu.memory_space<vmem>>, vector<32x128xf32>
    %cst = arith.constant dense<0.000000e+00> : vector<8x128xf32>
    %2 = tpu.matmul %0, %1, %cst {dimension_numbers = #tpu.dot_dimension_numbers<[1], [0], [0], [1], [0, 0, 1, 1], [], []>} : vector<8x32xf32>, vector<32x128xf32>, vector<8x128xf32> -> vector<8x128xf32>
    %cst_3 = arith.constant dense<0.000000e+00> : vector<128xf32>
    %3 = vector.multi_reduction <add>, %2, %cst_3 [0] : vector<8x128xf32> to vector<128xf32>
    %4 = vector.shape_cast %3 : vector<128xf32> to vector<1x128xf32>
    %cst_4 = arith.constant 8.000000e+00 : f32
    %5 = vector.broadcast %cst_4 : f32 to vector<1x128xf32>
    %6 = arith.divf %4, %5 : vector<1x128xf32>
    %7 = vector.broadcast %6 : vector<1x128xf32> to vector<8x128xf32>
    %8 = arith.subf %2, %7 : vector<8x128xf32>
    %9 = arith.mulf %8, %8 : vector<8x128xf32>
    %cst_5 = arith.constant dense<0.000000e+00> : vector<128xf32>
    %10 = vector.multi_reduction <add>, %9, %cst_5 [0] : vector<8x128xf32> to vector<128xf32>
    %11 = vector.shape_cast %10 : vector<128xf32> to vector<1x128xf32>
    %cst_6 = arith.constant 8.000000e+00 : f32
    %12 = vector.broadcast %cst_6 : f32 to vector<1x128xf32>
    %13 = arith.divf %11, %12 : vector<1x128xf32>
    %c0_7 = arith.constant 0 : index
    %c0_8 = arith.constant 0 : index
    %14 = vector.load %arg2[%c0_7, %c0_8] : memref<1x128xf32, #tpu.memory_space<vmem>>, vector<1x128xf32>
    %cst_9 = arith.constant 9.99999974E-6 : f32
    %15 = vector.broadcast %cst_9 : f32 to vector<1x128xf32>
    %16 = arith.addf %13, %15 : vector<1x128xf32>
    %17 = math.rsqrt %16 : vector<1x128xf32>
    %18 = arith.mulf %14, %17 : vector<1x128xf32>
    %19 = vector.broadcast %18 : vector<1x128xf32> to vector<8x128xf32>
    %20 = arith.mulf %8, %19 : vector<8x128xf32>
    %c0_10 = arith.constant 0 : index
    %c0_11 = arith.constant 0 : index
    %21 = vector.load %arg3[%c0_10, %c0_11] : memref<1x128xf32, #tpu.memory_space<vmem>>, vector<1x128xf32>
    %22 = vector.broadcast %21 : vector<1x128xf32> to vector<8x128xf32>
    %23 = arith.addf %20, %22 : vector<8x128xf32>
    %cst_12 = arith.constant 0.000000e+00 : f32
    %24 = vector.broadcast %cst_12 : f32 to vector<8x128xf32>
    %25 = arith.maximumf %23, %24 : vector<8x128xf32>
    %c0_13 = arith.constant 0 : index
    %c0_14 = arith.constant 0 : index
    %26 = vector.load %arg4[%c0_13, %c0_14] : memref<8x128xf32, #tpu.memory_space<vmem>>, vector<8x128xf32>
    tpu.vector_store %arg4[%c0_13, %c0_14], %25 {strides = array<i32>} : memref<8x128xf32, #tpu.memory_space<vmem>>, vector<8x128xf32>,
    return
  }
}

</mosaic_0001>

<bundles_post_ra>
// kernel: tpu_custom_call.1
= control target key start
LH: loop header
LB: loop body
LE: loop exit
PB: predicated region body
PF: predicated region fallthrough
CT: control target
= control target key end

     0   :  { %9 = vsyncpa [#allocation3], 0  ;;  %s450_s0 = inlined_call_operand.hbm [shape: f32[8,32], index: 0, kind: input, shape index: {}]   ;;  %s451_s1 = inlined_call_operand.hbm [shape: f32[32,128], index: 1, kind: input, shape index: {}]   ;;  %s452_s2 = inlined_call_operand.hbm [shape: f32[1,128], index: 2, kind: input, shape index: {}]   ;;  %s453_s3 = inlined_call_operand.hbm [shape: f32[1,128], index: 3, kind: input, shape index: {}]   ;;  %s454_s4 = inlined_call_operand.hbm [shape: f32[8,128], index: 4, kind: output, shape index: {}]  }
   0x1   :  { %10 = vsyncpa [#allocation6], 0 }
   0x2   :  { %11 = vsyncpa [#allocation9], 0 }
   0x3   :  { %12 = vsyncpa [#allocation4], 0  ;;  %s355_s15 = smov [#allocation5]   ;;  %s237_s19 = scalar_lea.hbm %s451_s1, 512 }
   0x4   :  { %s28_s16 = sshll.u32 %s355_s15, 4  ;;  %p238_p0 = scmp.ne.s32.totalorder %s451_s1, %s237_s19  ;;  %s29_s16 = int_to_ptr.vmem [resolvable:$true] %s28_s16 }
   0x5   :  { %p241_p1 = scmp.lt.u32.totalorder %s237_s19, %s451_s1 }
   0x7   :  { %p243_p2 = pnand %p241_p1, %p238_p0 }
   0x9   :  { %246 = shalt.err (!%p243_p2)
}
   0xa   :  { %s247_s24 = scalar_lea.vmem %s29_s16, 512  ;;  %p252_p4 = scmp.lt.s32.totalorder %s29_s16, %s29_s16 }
   0xb   :  { %p248_p3 = scmp.ne.s32.totalorder %s29_s16, %s247_s24  ;;  %p253_p5 = scmp.lt.s32.totalorder %s247_s24, %s247_s24 }
   0xd   :  { %p254_p6 = por %p253_p5, %p252_p4 }
   0xf   :  { %p255_p7 = pnand %p254_p6, %p248_p3 }
  0x11   :  { %258 = shalt.err (!%p255_p7)
}
  0x12   :  { %s356_s25 = smov 128   ;;  %s357_s26 = smov 8  }
  0x13   :  { %34 = dma.hbm_to_vmem [thread:$0]  %s451_s1, 512, %s29_s16, [#allocation6], %s356_s25, %s356_s25, %s357_s26  }
  0x14   :  { %s358_s29 = smov [#allocation2]   ;;  %s359_s5 = smov [#allocation7]  }
  0x15   :  { %s19_s30 = sshll.u32 %s358_s29, 4  ;;  %s41_s6 = sshll.u32 %s359_s5, 4  ;;  %s20_s30 = int_to_ptr.vmem [resolvable:$true] %s19_s30  ;;  %s42_s6 = int_to_ptr.vmem [resolvable:$true] %s41_s6 }
  0x16   :  { %s259_s9 = scalar_lea.hbm %s450_s0, 128 }
  0x17   :  { %p260_p8 = scmp.ne.s32.totalorder %s450_s0, %s259_s9  ;;  %p263_p9 = scmp.lt.u32.totalorder %s259_s9, %s450_s0 }
  0x19   :  { %p265_p10 = pnand %p263_p9, %p260_p8 }
  0x1b   :  { %268 = shalt.err (!%p265_p10)
}
  0x1c   :  { %s269_s1 = scalar_lea.vmem %s20_s30, 128  ;;  %p274_p12 = scmp.lt.s32.totalorder %s20_s30, %s20_s30 }
  0x1d   :  { %p270_p11 = scmp.ne.s32.totalorder %s20_s30, %s269_s1  ;;  %p275_p13 = scmp.lt.s32.totalorder %s269_s1, %s269_s1 }
  0x1f   :  { %p276_p0 = por %p275_p13, %p274_p12 }
  0x21   :  { %p277_p1 = pnand %p276_p0, %p270_p11 }
  0x23   :  { %280 = shalt.err (!%p277_p1)
}
  0x24   :  { %22 = dma.hbm_to_vmem [thread:$0]  %s450_s0, 128, %s20_s30, [#allocation3]  }
  0x25   :  { %s281_s18 = scalar_lea.hbm %s452_s2, 16 }
  0x26   :  { %p282_p2 = scmp.ne.s32.totalorder %s452_s2, %s281_s18  ;;  %p285_p3 = scmp.lt.u32.totalorder %s281_s18, %s452_s2 }
  0x28   :  { %p287_p4 = pnand %p285_p3, %p282_p2 }
  0x2a   :  { %290 = shalt.err (!%p287_p4)
}
  0x2b   :  { %s291_s23 = scalar_lea.vmem %s42_s6, 16  ;;  %s295_s24 = scalar_lea.vmem %s42_s6, 32 }
  0x2c   :  { %p292_p5 = scmp.ne.s32.totalorder %s42_s6, %s291_s23  ;;  %p296_p6 = scmp.lt.s32.totalorder %s42_s6, %s42_s6 }
  0x2d   :  { %p297_p7 = scmp.lt.s32.totalorder %s295_s24, %s291_s23 }
  0x2f   :  { %p298_p8 = por %p297_p7, %p296_p6 }
  0x31   :  { %p299_p9 = pnand %p298_p8, %p292_p5 }
  0x33   :  { %302 = shalt.err (!%p299_p9)
}
  0x34   :  { %44 = dma.hbm_to_vmem [thread:$0]  %s452_s2, 16, %s42_s6, [#allocation6]  }
  0x35   :  { %s360_s26 = smov [#allocation8]   ;;  %s303_s30 = scalar_lea.hbm %s453_s3, 16 }
  0x36   :  { %s51_s27 = sshll.u32 %s360_s26, 4  ;;  %p304_p10 = scmp.ne.s32.totalorder %s453_s3, %s303_s30  ;;  %s52_s27 = int_to_ptr.vmem [resolvable:$true] %s51_s27 }
  0x37   :  { %p307_p11 = scmp.lt.u32.totalorder %s303_s30, %s453_s3 }
  0x39   :  { %p309_p12 = pnand %p307_p11, %p304_p10 }
  0x3b   :  { %312 = shalt.err (!%p309_p12)
}
  0x3c   :  { %s313_s10 = scalar_lea.vmem %s52_s27, 16  ;;  %s317_s2 = scalar_lea.vmem %s52_s27, 32 }
  0x3d   :  { %p314_p13 = scmp.ne.s32.totalorder %s52_s27, %s313_s10  ;;  %p318_p0 = scmp.lt.s32.totalorder %s52_s27, %s52_s27 }
  0x3e   :  { %p319_p1 = scmp.lt.s32.totalorder %s317_s2, %s313_s10 }
  0x40   :  { %p320_p2 = por %p319_p1, %p318_p0 }
  0x42   :  { %p321_p3 = pnand %p320_p2, %p314_p13 }
  0x44   :  { %324 = shalt.err (!%p321_p3)
}
  0x45   :  { %54 = dma.hbm_to_vmem [thread:$0]  %s453_s3, 16, %s52_s27, [#allocation9]  }
  0x46   :  { %347 = dma.done.wait [#allocation3], 128  }
  0x47   :  { %348 = vsyncadd [#allocation3], 4294967168 }
  0x48   :  { %349 = dma.done.wait [#allocation6], 528  }
  0x49   :  { %350 = vsyncadd [#allocation6], 4294966768 }
  0x4a   :  { %351 = dma.done.wait [#allocation9], 16  }
  0x4b   :  { %352 = vsyncadd [#allocation9], 4294967280  ;;  %v361_v0 = vmov 0.0|0.0   ;;  %vm362_vm0 = vmmov 0   ;;  %v363_v1 = vmov 0.0   ;;  %v68_v2 = vld [vmem:[#allocation5] sm:$0xff]  ;;  %v168_v28 = vlaneseq }
  0x4c   :  { %219 = vmatprep.subr.bf16.mxu0 %v361_v0  ;;  %216 = vmatprep.mubr.msk.f32.mxu0 %vm362_vm0, %v363_v1  ;;  %v69_v3 = vld [vmem:[#allocation5 + $0x8] sm:$0xff]  ;;  %v70_v4 = vld [vmem:[#allocation5 + $0x10] sm:$0xff]  ;;  %v71_v6 = vld [vmem:[#allocation5 + $0x18] sm:$0xff]  ;;  %vm72_vm1 = vcmask 261120   ;;  %s364_s3 = smov [#allocation10]  }
  0x4d   :  { %v220_v5 = vpack.c.bf16 %v69_v3, %v68_v2  ;;  %v223_v7 = vpack.c.bf16 %v71_v6, %v70_v4  ;;  %v67_v8 = vld [vmem:[#allocation2] sm:$0xff]  ;;  %v169_v29 = vshrl.u32 %v168_v28, 7  ;;  %v163_v30 = vld [vmem:[#allocation7] sm:$0x1]  ;;  %v202_v35 = vld [vmem:[#allocation8] ss:$0 sm:$0xff] }
  0x4e   :  { %s190_s12 = sshll.u32 %s364_s3, 4  ;;  %s191_s12 = int_to_ptr.vmem [resolvable:$true] %s190_s12 }
  0x4f   :  { %221 = vmatpush3.bf16.msra.mxu0 %v220_v5  ;;  %v170_v31 = vsub.s32 0, %v169_v29  ;;  %s325_s13 = scalar_lea.vmem %s191_s12, 128  ;;  %p330_p5 = scmp.lt.s32.totalorder %s191_s12, %s191_s12 }
  0x50   :  { %222 = vmatprep.subr.bf16.mxu0 %v361_v0  ;;  %p326_p4 = scmp.ne.s32.totalorder %s191_s12, %s325_s13  ;;  %p331_p6 = scmp.lt.s32.totalorder %s325_s13, %s325_s13 }
  0x52   :  { %p332_p7 = por %p331_p6, %p330_p5 }
  0x53   :  { %224 = vmatpush3.bf16.msra.mxu0 %v223_v7 }
  0x54   :  { %p333_p8 = pnand %p332_p7, %p326_p4 }
  0x56   :  { %217 = vmatmul.mubr.msk.f32.vlgmr.msra.gmra.mrb[0].mxu0 %vm72_vm1, %v67_v8 }
 0x129   :  { %v142_v9 = vpop.f32.mrb[0].mxu0 }
 0x12a   :  { %v146_v10 = vrot.slane %v142_v9, 4  ;;  %v218_v11 = vpop.f32.mrb[1].mxu0 }
 0x12c   :  { %v147_v12 = vadd.f32 %v146_v10, %v142_v9 }
 0x12e   :  { %v148_v13 = vrot.slane %v147_v12, 2 }
 0x130   :  { %v149_v14 = vadd.f32 %v148_v13, %v147_v12 }
 0x132   :  { %v150_v15 = vrot.slane %v149_v14, 1 }
 0x134   :  { %v151_v16 = vadd.f32 %v150_v15, %v149_v14 }
 0x136   :  { %v153_v17 = vmul.f32 0.125, %v151_v16 }
 0x138   :  { %v154_v18 = vsub.f32 %v142_v9, %v153_v17 }
 0x13a   :  { %v155_v19 = vmul.f32 %v154_v18, %v154_v18 }
 0x13c   :  { %v156_v20 = vrot.slane %v155_v19, 4 }
 0x13e   :  { %v157_v21 = vadd.f32 %v156_v20, %v155_v19 }
 0x140   :  { %v158_v22 = vrot.slane %v157_v21, 2 }
 0x142   :  { %v159_v23 = vadd.f32 %v158_v22, %v157_v21 }
 0x144   :  { %v160_v24 = vrot.slane %v159_v23, 1 }
 0x146   :  { %v161_v25 = vadd.f32 %v160_v24, %v159_v23 }
 0x148   :  { %v162_v26 = vmul.f32 0.125, %v161_v25 }
 0x14a   :  { %v164_v27 = vadd.f32 1e-05, %v162_v26 }
 0x14c   :  { %235 = vrsqrt.f32 %v164_v27 }
 0x156   :  { %v236_v32 = vpop.eup %235 }
 0x157   :  { %v166_v33 = vmul.f32 %v236_v32, %v163_v30 }
 0x159   :  { %v171_v34 = vrot.slane %v166_v33, %v170_v31 }
 0x15b   :  { %v173_v36 = vmul.f32 %v171_v34, %v154_v18 }
 0x15d   :  { %v181_v37 = vadd.f32 %v202_v35, %v173_v36 }
 0x15f   :  { %v182_v38 = vmax.f32 %v181_v37, 0.0 }
 0x161   :  { %183 = vst [vmem:[#allocation10] sm:$0xff] %v182_v38 }
 0x162   :  { %336 = shalt.err (!%p333_p8)
}
 0x163   :  { %s337_s15 = scalar_lea.hbm %s454_s4, 128 }
 0x164   :  { %p338_p9 = scmp.ne.s32.totalorder %s454_s4, %s337_s15  ;;  %p341_p10 = scmp.lt.u32.totalorder %s337_s15, %s454_s4 }
 0x166   :  { %p343_p11 = pnand %p341_p10, %p338_p9 }
 0x168   :  { %346 = shalt.err (!%p343_p11)
}
 0x169   :  { %193 = dma.vmem_to_hbm [thread:$0]  %s191_s12, 128, %s454_s4, [#allocation4]  }
 0x16a   :  { %353 = dma.done.wait [#allocation4], 128  }
 0x16b   :  { %354 = vsyncadd [#allocation4], 4294967168 }
 0x16c   :  { %197 = vsyncpa [#allocation3], 1 }
 0x16d   :  { %198 = vsyncpa [#allocation6], 1 }
 0x16e   :  { %199 = vsyncpa [#allocation9], 1 }
 0x16f   :  { %200 = vsyncpa [#allocation4], 1 }

</bundles_post_ra>
